<compile_context>
chip_gen: v5e
topology: v5e:2x2
jax: 0.10.0
libtpu: 0.0.40
codegen_flags: <defaults>
</compile_context>

<pallas_src>
import functools

import jax
import jax.numpy as jnp
from jax.experimental import pallas as pl
from jax.experimental.pallas import tpu as pltpu


def _mlp_kernel(num_layers,
                x_ref, w_in_ref, b_in_ref, w_h_ref, b_h_ref, w_out_ref, b_out_ref,
                o_ref):
    """Fused MLP forward on one [TM, F] row tile resident in VMEM."""
    x = x_ref[...]                                                    # [TM, F]

    # Hoist loop-invariant ref loads (JAX does not CSE them across the
    # trace-time unrolled layer loop).
    w_h = w_h_ref[...]                                                # [Hp, Hp]
    b_h = b_h_ref[...]                                                # [1, Hp]

    h = jnp.dot(x, w_in_ref[...],
                preferred_element_type=jnp.float32) + b_in_ref[...]   # [TM, Hp]

    # The torch Sequential reuses the SAME hidden Linear module num_layers
    # times -> shared weights, static Python loop (unrolled at trace time).
    for _ in range(num_layers):
        h = jnp.maximum(h, 0.0)                                       # ReLU (VPU)
        h = jnp.dot(h, w_h, preferred_element_type=jnp.float32) + b_h

    h = jnp.tanh(h)                                                   # Tanh (EUP)
    o_ref[...] = (jnp.dot(h, w_out_ref[...],
                          preferred_element_type=jnp.float32)
                  + b_out_ref[...])                                   # [TM, 1]


def discriminator_forward(xv, params, num_layers, *, tile_m=2048):
    """xv: [..., dim+1] float array.  Returns [..., 1] float32."""
    w_in, b_in, w_h, b_h, w_out, b_out = params
    lead = xv.shape[:-1]
    f = xv.shape[-1]
    h_dim = w_in.shape[1]

    # --- MXU occupancy: zero-pad hidden dim to a multiple of 128 (exact). ---
    hp = ((h_dim + 127) // 128) * 128
    if hp != h_dim:
        dh = hp - h_dim
        w_in = jnp.pad(w_in, ((0, 0), (0, dh)))
        b_in = jnp.pad(b_in, ((0, 0), (0, dh)))
        w_h = jnp.pad(w_h, ((0, dh), (0, dh)))
        b_h = jnp.pad(b_h, ((0, 0), (0, dh)))
        w_out = jnp.pad(w_out, ((0, dh), (0, 0)))

    # --- Flatten leading dims to rows; pad rows to a multiple of the tile. ---
    x2d = xv.reshape(-1, f).astype(jnp.float32)
    m = x2d.shape[0]
    tm = min(tile_m, ((m + 7) // 8) * 8)          # tile rows, multiple of 8
    m_pad = ((m + tm - 1) // tm) * tm
    if m_pad != m:
        x2d = jnp.pad(x2d, ((0, m_pad - m), (0, 0)))
    grid = (m_pad // tm,)

    kernel = functools.partial(_mlp_kernel, num_layers)

    def const(shape):
        # Weights/biases: same (only) block every step -> stay VMEM-resident.
        return pl.BlockSpec(shape, lambda i: (0,) * len(shape))

    weight_bytes = (f * hp + hp + hp * hp + hp + hp + 1) * 4
    cost = pl.CostEstimate(
        flops=2 * m_pad * (f * hp + num_layers * hp * hp + hp),
        transcendentals=m_pad * hp,                       # tanh
        bytes_accessed=m_pad * (f + 1) * 4 + weight_bytes,
    )

    out2d = pl.pallas_call(
        kernel,
        out_shape=jax.ShapeDtypeStruct((m_pad, 1), jnp.float32),
        grid=grid,
        in_specs=[
            pl.BlockSpec((tm, f), lambda i: (i, 0)),      # x: tiled over rows
            const((f, hp)),                               # W_in  ([in, out])
            const((1, hp)),                               # b_in
            const((hp, hp)),                              # W_h (shared)
            const((1, hp)),                               # b_h
            const((hp, 1)),                               # W_out
            const((1, 1)),                                # b_out
        ],
        out_specs=pl.BlockSpec((tm, 1), lambda i: (i, 0)),
        compiler_params=pltpu.CompilerParams(
            dimension_semantics=("parallel",),            # v7x: 2 TCs share rows
            vmem_limit_bytes=32 * 1024 * 1024,            # ample headroom @ TM=2048
        ),
        cost_estimate=cost,
    )(x2d, w_in, b_in, w_h, b_h, w_out, b_out)

    return out2d[:m].reshape(*lead, 1)


def init_params(key, dim, hidden_dim):
    """Deterministic init mimicking torch.nn.Linear (uniform +/- 1/sqrt(fan_in)).
    Weights are stored as [in, out] so the kernel does x @ W directly."""
    fin = dim + 1
    k = jax.random.split(key, 6)

    def u(k_, shape, fan_in):
        bound = 1.0 / jnp.sqrt(jnp.float32(fan_in))
        return jax.random.uniform(k_, shape, jnp.float32, -bound, bound)

    w_in = u(k[0], (fin, hidden_dim), fin)
    b_in = u(k[1], (1, hidden_dim), fin)
    w_h = u(k[2], (hidden_dim, hidden_dim), hidden_dim)
    b_h = u(k[3], (1, hidden_dim), hidden_dim)
    w_out = u(k[4], (hidden_dim, 1), hidden_dim)
    b_out = u(k[5], (1, 1), hidden_dim)
    return w_in, b_in, w_h, b_h, w_out, b_out


def reference_forward(xv, params, num_layers):
    """Plain-JAX reference (same math, fp32, unpadded) for correctness check."""
    w_in, b_in, w_h, b_h, w_out, b_out = params
    h = xv.astype(jnp.float32) @ w_in + b_in
    for _ in range(num_layers):
        h = jnp.maximum(h, 0.0) @ w_h + b_h
    return jnp.tanh(h) @ w_out + b_out


if __name__ == "__main__":
    # Problem setup: setup['dim'] = 3 -> feature size 4; config: 3 layers, H=32.
    dim = 3
    num_layers = 3
    hidden_dim = 32

    key = jax.random.PRNGKey(0)
    k_param, k_x = jax.random.split(key)
    params = init_params(k_param, dim, hidden_dim)

    # XV: [L, C, dim+1]  (small shapes: L=2 points, C=4, feature = dim+1 = 4)
    xv = jax.random.normal(k_x, (2, 4, dim + 1), dtype=jnp.float32)

    out = discriminator_forward(xv, params, num_layers)
    out = jax.block_until_ready(out)

    ref = reference_forward(xv, params, num_layers)
    assert out.shape == (2, 4, 1), out.shape
    assert jnp.allclose(out, ref, atol=1e-5, rtol=1e-5), (
        float(jnp.max(jnp.abs(out - ref))))

    print("KERNEL_OK")
</pallas_src>

<mosaic_0001>
module attributes {stable_mosaic.version = 11 : i64} {
  func.func @_mlp_kernel(%arg0: i32, %arg1: memref<8x4xf32, #tpu.memory_space<vmem>>, %arg2: memref<4x128xf32, #tpu.memory_space<vmem>>, %arg3: memref<1x128xf32, #tpu.memory_space<vmem>>, %arg4: memref<128x128xf32, #tpu.memory_space<vmem>>, %arg5: memref<1x128xf32, #tpu.memory_space<vmem>>, %arg6: memref<128x1xf32, #tpu.memory_space<vmem>>, %arg7: memref<1x1xf32, #tpu.memory_space<vmem>>, %arg8: memref<8x1xf32, #tpu.memory_space<vmem>>) attributes {dimension_semantics = [#tpu.dimension_semantics<parallel>], iteration_bounds = array<i64: 1>, scalar_prefetch = 0 : i64, scratch_operands = 0 : i64, tpu.core_type = #tpu.core_type<tc>, window_params = [{transform_indices = @transform_0, window_bounds = array<i64: 8, 4>}, {pipeline_mode = #tpu.pipeline_mode<synchronous>, transform_indices = @transform_1, window_bounds = array<i64: 4, 128>}, {pipeline_mode = #tpu.pipeline_mode<synchronous>, transform_indices = @transform_2, window_bounds = array<i64: 1, 128>}, {pipeline_mode = #tpu.pipeline_mode<synchronous>, transform_indices = @transform_3, window_bounds = array<i64: 128, 128>}, {pipeline_mode = #tpu.pipeline_mode<synchronous>, transform_indices = @transform_4, window_bounds = array<i64: 1, 128>}, {pipeline_mode = #tpu.pipeline_mode<synchronous>, transform_indices = @transform_5, window_bounds = array<i64: 128, 1>}, {pipeline_mode = #tpu.pipeline_mode<synchronous>, transform_indices = @transform_6, window_bounds = array<i64: 1, 1>}, {transform_indices = @transform_7, window_bounds = array<i64: 8, 1>}]} {
    %c0 = arith.constant 0 : index
    %c0_0 = arith.constant 0 : index
    %0 = vector.load %arg1[%c0, %c0_0] : memref<8x4xf32, #tpu.memory_space<vmem>>, vector<8x4xf32>
    %c0_1 = arith.constant 0 : index
    %c0_2 = arith.constant 0 : index
    %1 = vector.load %arg4[%c0_1, %c0_2] : memref<128x128xf32, #tpu.memory_space<vmem>>, vector<128x128xf32>
    %c0_3 = arith.constant 0 : index
    %c0_4 = arith.constant 0 : index
    %2 = vector.load %arg5[%c0_3, %c0_4] : memref<1x128xf32, #tpu.memory_space<vmem>>, vector<1x128xf32>
    %c0_5 = arith.constant 0 : index
    %c0_6 = arith.constant 0 : index
    %3 = vector.load %arg2[%c0_5, %c0_6] : memref<4x128xf32, #tpu.memory_space<vmem>>, vector<4x128xf32>
    %cst = arith.constant dense<0.000000e+00> : vector<8x128xf32>
    %4 = tpu.matmul %0, %3, %cst {dimension_numbers = #tpu.dot_dimension_numbers<[1], [0], [0], [1], [0, 0, 1, 1], [], []>} : vector<8x4xf32>, vector<4x128xf32>, vector<8x128xf32> -> vector<8x128xf32>
    %c0_7 = arith.constant 0 : index
    %c0_8 = arith.constant 0 : index
    %5 = vector.load %arg3[%c0_7, %c0_8] : memref<1x128xf32, #tpu.memory_space<vmem>>, vector<1x128xf32>
    %6 = vector.broadcast %5 : vector<1x128xf32> to vector<8x128xf32>
    %7 = arith.addf %4, %6 : vector<8x128xf32>
    %cst_9 = arith.constant 0.000000e+00 : f32
    %8 = vector.broadcast %cst_9 : f32 to vector<8x128xf32>
    %9 = arith.maximumf %7, %8 : vector<8x128xf32>
    %cst_10 = arith.constant dense<0.000000e+00> : vector<8x128xf32>
    %10 = tpu.matmul %9, %1, %cst_10 {dimension_numbers = #tpu.dot_dimension_numbers<[1], [0], [0], [1], [0, 0, 1, 1], [], []>} : vector<8x128xf32>, vector<128x128xf32>, vector<8x128xf32> -> vector<8x128xf32>
    %11 = vector.broadcast %2 : vector<1x128xf32> to vector<8x128xf32>
    %12 = arith.addf %10, %11 : vector<8x128xf32>
    %cst_11 = arith.constant 0.000000e+00 : f32
    %13 = vector.broadcast %cst_11 : f32 to vector<8x128xf32>
    %14 = arith.maximumf %12, %13 : vector<8x128xf32>
    %cst_12 = arith.constant dense<0.000000e+00> : vector<8x128xf32>
    %15 = tpu.matmul %14, %1, %cst_12 {dimension_numbers = #tpu.dot_dimension_numbers<[1], [0], [0], [1], [0, 0, 1, 1], [], []>} : vector<8x128xf32>, vector<128x128xf32>, vector<8x128xf32> -> vector<8x128xf32>
    %16 = vector.broadcast %2 : vector<1x128xf32> to vector<8x128xf32>
    %17 = arith.addf %15, %16 : vector<8x128xf32>
    %cst_13 = arith.constant 0.000000e+00 : f32
    %18 = vector.broadcast %cst_13 : f32 to vector<8x128xf32>
    %19 = arith.maximumf %17, %18 : vector<8x128xf32>
    %cst_14 = arith.constant dense<0.000000e+00> : vector<8x128xf32>
    %20 = tpu.matmul %19, %1, %cst_14 {dimension_numbers = #tpu.dot_dimension_numbers<[1], [0], [0], [1], [0, 0, 1, 1], [], []>} : vector<8x128xf32>, vector<128x128xf32>, vector<8x128xf32> -> vector<8x128xf32>
    %21 = vector.broadcast %2 : vector<1x128xf32> to vector<8x128xf32>
    %22 = arith.addf %20, %21 : vector<8x128xf32>
    %23 = math.tanh %22 : vector<8x128xf32>
    %c0_15 = arith.constant 0 : index
    %c0_16 = arith.constant 0 : index
    %24 = vector.load %arg6[%c0_15, %c0_16] : memref<128x1xf32, #tpu.memory_space<vmem>>, vector<128x1xf32>
    %cst_17 = arith.constant dense<0.000000e+00> : vector<8x1xf32>
    %25 = tpu.matmul %23, %24, %cst_17 {dimension_numbers = #tpu.dot_dimension_numbers<[1], [0], [0], [1], [0, 0, 1, 1], [], []>} : vector<8x128xf32>, vector<128x1xf32>, vector<8x1xf32> -> vector<8x1xf32>
    %c0_18 = arith.constant 0 : index
    %c0_19 = arith.constant 0 : index
    %26 = vector.load %arg7[%c0_18, %c0_19] : memref<1x1xf32, #tpu.memory_space<vmem>>, vector<1x1xf32>
    %27 = vector.broadcast %26 : vector<1x1xf32> to vector<8x1xf32>
    %28 = arith.addf %25, %27 : vector<8x1xf32>
    %c0_20 = arith.constant 0 : index
    %c0_21 = arith.constant 0 : index
    %29 = vector.load %arg8[%c0_20, %c0_21] : memref<8x1xf32, #tpu.memory_space<vmem>>, vector<8x1xf32>
    tpu.vector_store %arg8[%c0_20, %c0_21], %28 {strides = array<i32>} : memref<8x1xf32, #tpu.memory_space<vmem>>, vector<8x1xf32>,
    return
  }
  func.func @transform_0(%arg0: i32) -> (i32, i32) {
    %c0_i32 = arith.constant 0 : i32
    %c0_i32_0 = arith.constant 0 : i32
    return %arg0, %c0_i32 : i32, i32
  }
  func.func @transform_1(%arg0: i32) -> (i32, i32) {
    %c0_i32 = arith.constant 0 : i32
    %c0_i32_0 = arith.constant 0 : i32
    %c0_i32_1 = arith.constant 0 : i32
    return %c0_i32, %c0_i32_0 : i32, i32
  }
  func.func @transform_2(%arg0: i32) -> (i32, i32) {
    %c0_i32 = arith.constant 0 : i32
    %c0_i32_0 = arith.constant 0 : i32
    %c0_i32_1 = arith.constant 0 : i32
    return %c0_i32, %c0_i32_0 : i32, i32
  }
  func.func @transform_3(%arg0: i32) -> (i32, i32) {
    %c0_i32 = arith.constant 0 : i32
    %c0_i32_0 = arith.constant 0 : i32
    %c0_i32_1 = arith.constant 0 : i32
    return %c0_i32, %c0_i32_0 : i32, i32
  }
  func.func @transform_4(%arg0: i32) -> (i32, i32) {
    %c0_i32 = arith.constant 0 : i32
    %c0_i32_0 = arith.constant 0 : i32
    %c0_i32_1 = arith.constant 0 : i32
    return %c0_i32, %c0_i32_0 : i32, i32
  }
  func.func @transform_5(%arg0: i32) -> (i32, i32) {
    %c0_i32 = arith.constant 0 : i32
    %c0_i32_0 = arith.constant 0 : i32
    %c0_i32_1 = arith.constant 0 : i32
    return %c0_i32, %c0_i32_0 : i32, i32
  }
  func.func @transform_6(%arg0: i32) -> (i32, i32) {
    %c0_i32 = arith.constant 0 : i32
    %c0_i32_0 = arith.constant 0 : i32
    %c0_i32_1 = arith.constant 0 : i32
    return %c0_i32, %c0_i32_0 : i32, i32
  }
  func.func @transform_7(%arg0: i32) -> (i32, i32) {
    %c0_i32 = arith.constant 0 : i32
    %c0_i32_0 = arith.constant 0 : i32
    return %arg0, %c0_i32 : i32, i32
  }
}

</mosaic_0001>

<bundles_post_ra>
// kernel: tpu_custom_call.1
= control target key start
LH: loop header
LB: loop body
LE: loop exit
PB: predicated region body
PF: predicated region fallthrough
CT: control target
= control target key end

     0   :  { %vm55_vm0 = vcmask 1043456   ;;  %vm51_vm1 = vcmask 31744   ;;  %vm186_vm2 = vcmask 7168   ;;  %s353_s1 = inlined_call_operand.vmem [shape: f32[4,128], index: 1, kind: input, shape index: {}]   ;;  %s354_s0 = inlined_call_operand.vmem [shape: f32[8,4], index: 0, kind: input, shape index: {}]   ;;  %s355_s3 = inlined_call_operand.vmem [shape: f32[128,128], index: 3, kind: input, shape index: {}]   ;;  %s356_s2 = inlined_call_operand.vmem [shape: f32[1,128], index: 2, kind: input, shape index: {}]   ;;  %s357_s4 = inlined_call_operand.vmem [shape: f32[1,128], index: 4, kind: input, shape index: {}]   ;;  %s358_s5 = inlined_call_operand.vmem [shape: f32[128,1], index: 5, kind: input, shape index: {}]   ;;  %s359_s6 = inlined_call_operand.<no memory space> [shape: f32[1,1], index: 6, kind: input, shape index: {}]   ;;  %s360_s7 = inlined_call_operand.vmem [shape: f32[8,1], index: 7, kind: output, shape index: {}]  }
   0x1   :  { %v46_v0 = vld [vmem:[%s353_s1] sm:$0xf]  ;;  %v44_v2 = vld [vmem:[%s355_s3 + $0x78] sm:$0xff]  ;;  %v43_v3 = vld [vmem:[%s355_s3 + $0x70] sm:$0xff]  ;;  %v12_v45 = vstv %s359_s6 }
   0x2   :  { %v28_v1 = vld [vmem:[%s354_s0] sm:$0xff]  ;;  %192 = vmatpush.msk.msra.mxu0 %vm55_vm0, %v46_v0  ;;  %83 = vmatpush.msra.mxu1 %v44_v2  ;;  %v42_v4 = vld [vmem:[%s355_s3 + $0x68] sm:$0xff]  ;;  %v40_v6 = vld [vmem:[%s355_s3 + $0x58] sm:$0xff]  ;;  %13 = vst [vmem:[#allocation2] sm:$0x1] %v12_v45 }
   0x3   :  { %193 = vmatmul.msk.f32.vlgmr.msra.gmra.mxu0 %vm51_vm1, %v28_v1  ;;  %104 = vmatpush.msra.mxu2 %v44_v2  ;;  %v41_v5 = vld [vmem:[%s355_s3 + $0x60] sm:$0xff]  ;;  %v39_v7 = vld [vmem:[%s355_s3 + $0x50] sm:$0xff]  ;;  %v38_v8 = vld [vmem:[%s355_s3 + $0x48] sm:$0xff] }
   0x4   :  { %84 = vmatpush.msra.mxu1 %v43_v3  ;;  %125 = vmatpush.msra.mxu3 %v44_v2  ;;  %v37_v9 = vld [vmem:[%s355_s3 + $0x40] sm:$0xff]  ;;  %v36_v10 = vld [vmem:[%s355_s3 + $0x38] sm:$0xff]  ;;  %v35_v11 = vld [vmem:[%s355_s3 + $0x30] sm:$0xff] }
   0x5   :  { %105 = vmatpush.msra.mxu2 %v43_v3  ;;  %v34_v12 = vld [vmem:[%s355_s3 + $0x28] sm:$0xff]  ;;  %v33_v13 = vld [vmem:[%s355_s3 + $0x20] sm:$0xff]  ;;  %v32_v14 = vld [vmem:[%s355_s3 + $0x18] sm:$0xff] }
   0x6   :  { %85 = vmatpush.msra.mxu1 %v42_v4  ;;  %126 = vmatpush.msra.mxu3 %v43_v3  ;;  %v31_v15 = vld [vmem:[%s355_s3 + $0x10] sm:$0xff]  ;;  %v30_v16 = vld [vmem:[%s355_s3 + $0x8] sm:$0xff]  ;;  %v29_v17 = vld [vmem:[%s355_s3] sm:$0xff] }
   0x7   :  { %106 = vmatpush.msra.mxu2 %v42_v4  ;;  %v194_v18 = vld [vmem:[%s356_s2] ss:$0 sm:$0xff]  ;;  %v161_v26 = vld [vmem:[%s358_s5 + $0x78] sm:$0xff]  ;;  %v160_v27 = vld [vmem:[%s358_s5 + $0x70] sm:$0xff] }
   0x8   :  { %86 = vmatpush.msra.mxu1 %v41_v5  ;;  %127 = vmatpush.msra.mxu3 %v42_v4  ;;  %v195_v22 = vld [vmem:[%s357_s4] ss:$0 sm:$0xff]  ;;  %v159_v28 = vld [vmem:[%s358_s5 + $0x68] sm:$0xff]  ;;  %v157_v30 = vld [vmem:[%s358_s5 + $0x58] sm:$0xff] }
   0x9   :  { %107 = vmatpush.msra.mxu2 %v41_v5  ;;  %166 = vmatpush.msrb.mxu0 %v161_v26  ;;  %v158_v29 = vld [vmem:[%s358_s5 + $0x60] sm:$0xff]  ;;  %v156_v31 = vld [vmem:[%s358_s5 + $0x50] sm:$0xff]  ;;  %v155_v32 = vld [vmem:[%s358_s5 + $0x48] sm:$0xff] }
   0xa   :  { %87 = vmatpush.msra.mxu1 %v40_v6  ;;  %128 = vmatpush.msra.mxu3 %v41_v5  ;;  %v154_v33 = vld [vmem:[%s358_s5 + $0x40] sm:$0xff]  ;;  %v153_v34 = vld [vmem:[%s358_s5 + $0x38] sm:$0xff]  ;;  %v152_v35 = vld [vmem:[%s358_s5 + $0x30] sm:$0xff] }
   0xb   :  { %108 = vmatpush.msra.mxu2 %v40_v6  ;;  %167 = vmatpush.msrb.mxu0 %v160_v27  ;;  %v151_v36 = vld [vmem:[%s358_s5 + $0x28] sm:$0xff]  ;;  %v150_v40 = vld [vmem:[%s358_s5 + $0x20] sm:$0xff]  ;;  %v149_v41 = vld [vmem:[%s358_s5 + $0x18] sm:$0xff] }
   0xc   :  { %88 = vmatpush.msra.mxu1 %v39_v7  ;;  %129 = vmatpush.msra.mxu3 %v40_v6  ;;  %v148_v42 = vld [vmem:[%s358_s5 + $0x10] sm:$0xff]  ;;  %v147_v43 = vld [vmem:[%s358_s5 + $0x8] sm:$0xff]  ;;  %v146_v44 = vld [vmem:[%s358_s5] sm:$0xff] }
   0xd   :  { %109 = vmatpush.msra.mxu2 %v39_v7  ;;  %168 = vmatpush.msrb.mxu0 %v159_v28  ;;  %v196_v49 = vld [vmem:[#allocation2] ss:$0 sm:$0xff] }
   0xe   :  { %89 = vmatpush.msra.mxu1 %v38_v8  ;;  %130 = vmatpush.msra.mxu3 %v39_v7 }
   0xf   :  { %110 = vmatpush.msra.mxu2 %v38_v8  ;;  %169 = vmatpush.msrb.mxu0 %v158_v29 }
  0x10   :  { %90 = vmatpush.msra.mxu1 %v37_v9  ;;  %131 = vmatpush.msra.mxu3 %v38_v8 }
  0x11   :  { %111 = vmatpush.msra.mxu2 %v37_v9  ;;  %170 = vmatpush.msrb.mxu0 %v157_v30 }
  0x12   :  { %91 = vmatpush.msra.mxu1 %v36_v10  ;;  %132 = vmatpush.msra.mxu3 %v37_v9 }
  0x13   :  { %112 = vmatpush.msra.mxu2 %v36_v10  ;;  %171 = vmatpush.msrb.mxu0 %v156_v31 }
  0x14   :  { %92 = vmatpush.msra.mxu1 %v35_v11  ;;  %133 = vmatpush.msra.mxu3 %v36_v10 }
  0x15   :  { %113 = vmatpush.msra.mxu2 %v35_v11  ;;  %172 = vmatpush.msrb.mxu0 %v155_v32 }
  0x16   :  { %93 = vmatpush.msra.mxu1 %v34_v12  ;;  %134 = vmatpush.msra.mxu3 %v35_v11 }
  0x17   :  { %114 = vmatpush.msra.mxu2 %v34_v12  ;;  %173 = vmatpush.msrb.mxu0 %v154_v33 }
  0x18   :  { %94 = vmatpush.msra.mxu1 %v33_v13  ;;  %135 = vmatpush.msra.mxu3 %v34_v12 }
  0x19   :  { %115 = vmatpush.msra.mxu2 %v33_v13  ;;  %174 = vmatpush.msrb.mxu0 %v153_v34 }
  0x1a   :  { %95 = vmatpush.msra.mxu1 %v32_v14  ;;  %136 = vmatpush.msra.mxu3 %v33_v13 }
  0x1b   :  { %116 = vmatpush.msra.mxu2 %v32_v14  ;;  %175 = vmatpush.msrb.mxu0 %v152_v35 }
  0x1c   :  { %137 = vmatpush.msra.mxu3 %v32_v14  ;;  %96 = vmatpush.msra.mxu1 %v31_v15 }
  0x1d   :  { %117 = vmatpush.msra.mxu2 %v31_v15  ;;  %176 = vmatpush.msrb.mxu0 %v151_v36 }
  0x1e   :  { %138 = vmatpush.msra.mxu3 %v31_v15  ;;  %97 = vmatpush.msra.mxu1 %v30_v16 }
  0x1f   :  { %118 = vmatpush.msra.mxu2 %v30_v16  ;;  %177 = vmatpush.msrb.mxu0 %v150_v40 }
  0x20   :  { %139 = vmatpush.msra.mxu3 %v30_v16  ;;  %98 = vmatpush.msra.mxu1 %v29_v17 }
  0x21   :  { %119 = vmatpush.msra.mxu2 %v29_v17  ;;  %178 = vmatpush.msrb.mxu0 %v149_v41 }
  0x22   :  { %140 = vmatpush.msra.mxu3 %v29_v17 }
  0x23   :  { %179 = vmatpush.msrb.mxu0 %v148_v42 }
  0x25   :  { %180 = vmatpush.msrb.mxu0 %v147_v43 }
  0x27   :  { %181 = vmatpush.msrb.mxu0 %v146_v44 }
  0x80   :  { %v76_v19 = vpop.f32.mrf.mxu0 }
  0x81   :  { %v77_v20 = vadd.f32 %v194_v18, %v76_v19 }
  0x83   :  { %v79_v21 = vmax.f32 %v77_v20, 0.0 }
  0x85   :  { %99 = vmatmul.f32.vlgmr.msra.gmra.mxu1 %v79_v21 }
 0x102   :  { %v100_v23 = vpop.f32.mrf.mxu1 }
 0x103   :  { %v101_v24 = vadd.f32 %v195_v22, %v100_v23 }
 0x105   :  { %v103_v25 = vmax.f32 %v101_v24, 0.0 }
 0x107   :  { %120 = vmatmul.f32.vlgmr.msra.gmra.mxu2 %v103_v25 }
 0x18a   :  { %v121_v37 = vpop.f32.mrf.mxu2 }
 0x18b   :  { %v122_v38 = vadd.f32 %v195_v22, %v121_v37 }
 0x18d   :  { %v124_v39 = vmax.f32 %v122_v38, 0.0 }
 0x18f   :  { %141 = vmatmul.f32.vlgmr.msra.gmra.mxu3 %v124_v39 }
 0x212   :  { %v142_v46 = vpop.f32.mrf.mxu3 }
 0x213   :  { %v143_v47 = vadd.f32 %v195_v22, %v142_v46 }
 0x215   :  { %197 = vtanh.f32 %v143_v47 }
 0x21b   :  { %v198_v48 = vpop.eup %197 }
 0x21c   :  { %182 = vmatmul.f32.vlgmr.msrb.gmra.mxu0 %v198_v48 }
 0x299   :  { %v183_v50 = vpop.f32.mrf.mxu0 }
 0x29a   :  { %v184_v51 = vadd.f32 %v196_v49, %v183_v50 }
 0x29c   :  { %187 = vst.msk [vmem:[%s360_s7] sm:$0xff] %vm186_vm2, %v184_v51 }

</bundles_post_ra>
